<compile_context>
chip_gen: v7x
topology: tpu7x:2x2x1
jax: 0.10.0
libtpu: 0.0.40
codegen_flags: <defaults>
</compile_context>

<pallas_src>
import functools

import jax
import jax.numpy as jnp
from jax import lax
from jax.experimental import pallas as pl
from jax.experimental.pallas import tpu as pltpu


def _round_up(x: int, m: int) -> int:
    return ((x + m - 1) // m) * m


def _tpu_caps():
    """Return (vmem_capacity_bytes, mxu_output_dim) with conservative fallbacks."""
    vmem_cap = 64 << 20        # conservative default (v7x-sized)
    mxu_dim = 128              # safe on every generation
    kind = ""
    try:
        kind = jax.devices()[0].device_kind.lower()
    except Exception:
        pass
    try:
        info = pltpu.get_tpu_info()
        vmem_cap = int(getattr(info, "vmem_capacity_bytes", vmem_cap))
    except Exception:
        if "v7" in kind or "7x" in kind:
            vmem_cap = 64 << 20
        elif kind:
            vmem_cap = 128 << 20
    if any(tag in kind for tag in ("v6", "v7", "7x", "trillium")):
        mxu_dim = 256
    return vmem_cap, mxu_dim


def _choose_tile_and_pad(d: int, tile_max: int):
    """Pick a multiple-of-128 feature tile <= tile_max; pad D if divisors are bad."""
    d128 = _round_up(d, 128)
    tile_max = max(128, min(tile_max, d128, 2048))
    best = 128
    for t in range(128, tile_max + 1, 128):
        if d128 % t == 0:
            best = t
    if best * 4 <= tile_max:
        # Divisors force tiny tiles (e.g. d128/128 prime): pad D up to a
        # multiple of a full-budget tile; the in-kernel mask handles the tail.
        best = tile_max
        d_pad = _round_up(d128, best)
    else:
        d_pad = d128
    return best, d_pad


def _vicreg_loss_ref(a, b, invariance_weight=25.0, variance_weight=25.0,
                     covariance_weight=1.0, regularize_both=True,
                     variance_target=1.0, epsilon=1e-4):
    """Pure-JAX reference mirroring the PyTorch semantics (verification + fallback)."""
    a = jnp.asarray(a, jnp.float32)
    b = jnp.asarray(b, jnp.float32)

    def var_cov(x):
        n, d = x.shape
        xc = x - jnp.mean(x, axis=0, keepdims=True)
        cov = (xc.T @ xc) / (n - 1)
        std = jnp.sqrt(jnp.diagonal(cov) + epsilon)
        var_term = jnp.mean(jnp.maximum(variance_target - std, 0.0))
        off = cov * (1.0 - jnp.eye(d, dtype=cov.dtype))
        cov_term = jnp.sum(off ** 2) / d
        return var_term, cov_term

    inv = jnp.mean((a - b) ** 2)
    var_t, cov_t = var_cov(a)
    if regularize_both:
        vb, cb = var_cov(b)
        var_t, cov_t = var_t + vb, cov_t + cb
    return {'invariance_loss': invariance_weight * inv,
            'variance_loss': variance_weight * var_t,
            'covariance_loss': covariance_weight * cov_t}


def _vicreg_kernel(a_ref, b_ref, out_ref, *scratch,
                   inv_w, var_w, cov_w, regularize_both, fused_gram,
                   gamma, epsilon, n_total, d_total, tile_d, inv_rows,
                   mxu_dtype, needs_mask):
    step = pl.program_id(0)
    last = pl.num_programs(0) - 1
    inv_nm1 = 1.0 / (n_total - 1)

    inv_acc = scratch[0]
    if fused_gram:
        g_ab, hinge_a, dsq_a, hinge_b, dsq_b = scratch[1:]
        grams = (g_ab,)
    elif regularize_both:
        g_a, hinge_a, dsq_a, g_b, hinge_b, dsq_b = scratch[1:]
        grams = (g_a, g_b)
    else:
        g_a, hinge_a, dsq_a = scratch[1:]
        grams = (g_a,)

    # ---- init accumulators on the first feature tile ----
    @pl.when(step == 0)
    def _init():
        inv_acc[...] = jnp.zeros_like(inv_acc)
        for g in grams:
            g[...] = jnp.zeros_like(g)
        hinge_a[...] = jnp.zeros_like(hinge_a)
        dsq_a[...] = jnp.zeros_like(dsq_a)
        if regularize_both:
            hinge_b[...] = jnp.zeros_like(hinge_b)
            dsq_b[...] = jnp.zeros_like(dsq_b)

    af = a_ref[...].astype(jnp.float32)
    bf = b_ref[...].astype(jnp.float32)

    # ---- invariance (MSE) partials: keep sublane-partial sums, reduce once
    # at finalize (removes a cross-sublane XLU reduce from every grid step) ----
    diff = af - bf
    sq = diff * diff
    if inv_rows > 1:
        inv_acc[...] += sq.reshape(n_total // inv_rows, inv_rows, tile_d).sum(axis=0)
    else:
        inv_acc[...] += sq.sum(axis=0, keepdims=True)

    if needs_mask:
        col = step * tile_d + lax.broadcasted_iota(jnp.int32, (1, tile_d), 1)
        valid = col < d_total
    else:
        valid = None

    def branch_stats(xf, hinge_ref, dsq_ref):
        # Full sample axis (N) is resident, so per-feature mean / variance of
        # this feature tile are exact.
        # TODO(synk): opt-in uncentered-Gram fast path (rank-1 mean correction
        # at finalize) to cut VPU passes for bf16 inputs.
        mean = jnp.mean(xf, axis=0, keepdims=True)
        xc = xf - mean
        diag = jnp.sum(xc * xc, axis=0, keepdims=True) * inv_nm1     # (1, T)
        std = jnp.sqrt(diag + epsilon)
        hinge = jnp.maximum(gamma - std, 0.0)
        if valid is not None:
            hinge = jnp.where(valid, hinge, 0.0)   # zero-padded columns
        hinge_ref[...] += hinge
        dsq_ref[...] += diag * diag
        return xc

    xc_a = branch_stats(af, hinge_a, dsq_a)
    xc_b = branch_stats(bf, hinge_b, dsq_b) if regularize_both else None

    def gram_update(g_ref, x):
        xm = x.astype(mxu_dtype)
        # N x N Gram, contracting over the (large) feature axis -> MXU-friendly.
        g_ref[...] += lax.dot_general(
            xm, xm, (((1,), (1,)), ((), ())),
            preferred_element_type=jnp.float32)

    if fused_gram:
        # Both branches share one MXU pass: stack rows -> a single (2N,2N) Gram.
        gram_update(g_ab, jnp.concatenate([xc_a, xc_b], axis=0))
    else:
        gram_update(g_a, xc_a)
        if regularize_both:
            gram_update(g_b, xc_b)

    # ---- finalize on the last feature tile ----
    @pl.when(step == last)
    def _finalize():
        inv = jnp.sum(inv_acc[...]) * (1.0 / (n_total * d_total))
        scale = inv_nm1 * inv_nm1          # Gram -> covariance Frobenius scale

        if fused_gram:
            g = g_ab[...]
            frob_a = jnp.sum(g[:n_total, :n_total] ** 2) * scale
            frob_b = jnp.sum(g[n_total:, n_total:] ** 2) * scale
        elif regularize_both:
            frob_a = jnp.sum(g_a[...] ** 2) * scale
            frob_b = jnp.sum(g_b[...] ** 2) * scale
        else:
            frob_a = jnp.sum(g_a[...] ** 2) * scale
            frob_b = 0.0

        # TODO(synk): ||cov||_F^2 - sum(diag^2) cancels when cov is nearly
        # diagonal; a compensated accumulation would track the reference more
        # tightly late in training.
        var_t = jnp.sum(hinge_a[...])
        cov_t = frob_a - jnp.sum(dsq_a[...])
        if regularize_both:
            var_t = var_t + jnp.sum(hinge_b[...])
            cov_t = cov_t + (frob_b - jnp.sum(dsq_b[...]))

        out_ref[0] = inv_w * inv
        out_ref[1] = var_w * (var_t * (1.0 / d_total))
        out_ref[2] = cov_w * (cov_t * (1.0 / d_total))


def vicreg_loss_pallas(a, b, *, invariance_weight=25.0, variance_weight=25.0,
                       covariance_weight=1.0, regularize_both=True,
                       variance_target=1.0, epsilon=1e-4, gram_dtype=None):
    a = jnp.asarray(a)
    b = jnp.asarray(b)
    n, d = a.shape
    assert b.shape == (n, d), (a.shape, b.shape)
    dt = jnp.promote_types(a.dtype, b.dtype)
    a = a.astype(dt)
    b = b.astype(dt)

    if n < 2:
        # Reference semantics: var/cov regularization terms are zero when N < 2.
        inv = jnp.mean((a.astype(jnp.float32) - b.astype(jnp.float32)) ** 2)
        zero = jnp.asarray(0.0, jnp.float32)
        return {'invariance_loss': invariance_weight * inv,
                'variance_loss': variance_weight * zero,
                'covariance_loss': covariance_weight * zero}

    itemsize = jnp.dtype(dt).itemsize
    n_grams = 2 if regularize_both else 1
    vmem_cap, mxu_dim = _tpu_caps()

    # Generation-aware budget: headroom below physical VMEM (v7x ~52 MiB of 64,
    # v5e/v6e up to ~100 MiB of 128).
    budget = max(min(vmem_cap - (12 << 20), 100 << 20), 24 << 20)

    fused = bool(regularize_both and (2 * n) <= mxu_dim)
    if fused:
        gram_bytes = _round_up(2 * n, 8) * _round_up(2 * n, 128) * 4
    else:
        gram_bytes = n_grams * _round_up(n, 8) * _round_up(n, 128) * 4

    inv_rows = 8 if (n % 8 == 0 and n >= 8) else 1
    n8 = _round_up(n, 8)
    # Per feature column: 2 inputs x 2 pipeline buffers + sublane-padded
    # per-column statistic accumulators.
    per_col = 4 * n8 * itemsize + (8 + 16 * n_grams) * 4
    slack = 6 << 20

    if gram_bytes + slack + per_col * 128 > budget:
        # TODO(synk): block-tile the N x N Gram for very large N instead of
        # falling back to plain XLA.
        return _vicreg_loss_ref(a, b, invariance_weight=invariance_weight,
                                variance_weight=variance_weight,
                                covariance_weight=covariance_weight,
                                regularize_both=regularize_both,
                                variance_target=variance_target,
                                epsilon=epsilon)

    tile_max = (budget - gram_bytes - slack) // per_col
    tile_max = max(128, (tile_max // 128) * 128)
    tile_d, d_pad = _choose_tile_and_pad(d, tile_max)
    num_tiles = d_pad // tile_d
    needs_mask = d_pad != d

    if needs_mask:
        pad = d_pad - d
        a = jnp.pad(a, ((0, 0), (0, pad)))
        b = jnp.pad(b, ((0, 0), (0, pad)))

    # MXU dtype: native by default (keeps f32 accuracy); opt-in bf16 for speed.
    mxu_dtype = jnp.dtype(gram_dtype) if gram_dtype is not None else jnp.dtype(dt)

    scratch_shapes = [pltpu.VMEM((inv_rows, tile_d), jnp.float32)]  # inv partials
    if fused:
        scratch_shapes += [
            pltpu.VMEM((2 * n, 2 * n), jnp.float32),  # stacked Gram (a ; b)
            pltpu.VMEM((1, tile_d), jnp.float32),     # hinge(a)
            pltpu.VMEM((1, tile_d), jnp.float32),     # diag^2(a)
            pltpu.VMEM((1, tile_d), jnp.float32),     # hinge(b)
            pltpu.VMEM((1, tile_d), jnp.float32),     # diag^2(b)
        ]
    else:
        scratch_shapes += [
            pltpu.VMEM((n, n), jnp.float32),          # Gram(a)
            pltpu.VMEM((1, tile_d), jnp.float32),     # hinge(a)
            pltpu.VMEM((1, tile_d), jnp.float32),     # diag^2(a)
        ]
        if regularize_both:
            scratch_shapes += [
                pltpu.VMEM((n, n), jnp.float32),      # Gram(b)
                pltpu.VMEM((1, tile_d), jnp.float32), # hinge(b)
                pltpu.VMEM((1, tile_d), jnp.float32), # diag^2(b)
            ]

    vmem_needed = (4 * n8 * tile_d * itemsize + gram_bytes
                   + (8 + 16 * n_grams) * 4 * tile_d + (1 << 20))
    vmem_limit = int(min(max(vmem_needed + (4 << 20), 32 << 20),
                         max(vmem_cap - (8 << 20), 32 << 20)))
    vmem_limit = int(max(vmem_limit, vmem_needed + (2 << 20)))

    m_rows = 2 * n if fused else n
    cost = pl.CostEstimate(
        flops=int(2 * m_rows * m_rows * d_pad * (1 if fused else n_grams)
                  + 12 * n * d_pad),
        transcendentals=int(n_grams * d_pad),
        bytes_accessed=int(2 * n * d_pad * itemsize + 3 * 4),
    )

    kernel = functools.partial(
        _vicreg_kernel,
        inv_w=float(invariance_weight), var_w=float(variance_weight),
        cov_w=float(covariance_weight), regularize_both=bool(regularize_both),
        fused_gram=fused, gamma=float(variance_target), epsilon=float(epsilon),
        n_total=int(n), d_total=int(d), tile_d=int(tile_d),
        inv_rows=int(inv_rows), mxu_dtype=mxu_dtype, needs_mask=bool(needs_mask),
    )

    out = pl.pallas_call(
        kernel,
        out_shape=jax.ShapeDtypeStruct((3,), jnp.float32),
        grid_spec=pltpu.PrefetchScalarGridSpec(
            num_scalar_prefetch=0,
            grid=(num_tiles,),
            in_specs=[pl.BlockSpec((n, tile_d), lambda i: (0, i)),
                      pl.BlockSpec((n, tile_d), lambda i: (0, i))],
            out_specs=pl.BlockSpec(memory_space=pltpu.MemorySpace.SMEM),
            scratch_shapes=scratch_shapes),
        compiler_params=pltpu.CompilerParams(
            # TODO(synk): leading "parallel" axis (a-vs-b or D halves) with
            # per-core accumulators to use both v7x TensorCores.
            dimension_semantics=("arbitrary",),
            vmem_limit_bytes=vmem_limit),
        cost_estimate=cost,
    )(a, b)

    return {'invariance_loss': out[0],
            'variance_loss': out[1],
            'covariance_loss': out[2]}


class VICRegLoss:
    """JAX/Pallas port of the PyTorch VICRegLoss module (stateless; no params)."""

    def __init__(self, invariance_weight=25.0, variance_weight=25.0,
                 covariance_weight=1.0, regularize_both=True,
                 variance_target=1.0, epsilon=1e-4):
        self.invariance_weight = invariance_weight
        self.variance_weight = variance_weight
        self.covariance_weight = covariance_weight
        self.regularize_both = regularize_both
        self.variance_target = variance_target
        self.epsilon = epsilon

    def __call__(self, a, b):
        return vicreg_loss_pallas(
            a, b,
            invariance_weight=self.invariance_weight,
            variance_weight=self.variance_weight,
            covariance_weight=self.covariance_weight,
            regularize_both=self.regularize_both,
            variance_target=self.variance_target,
            epsilon=self.epsilon,
        )


if __name__ == "__main__":
    key = jax.random.PRNGKey(0)
    ka, kb = jax.random.split(key)

    # Small (N x D) representations; D=256 exercises the feature-tiled grid.
    N, D = 8, 256
    a = jax.random.normal(ka, (N, D), dtype=jnp.float32)
    b = a + 0.1 * jax.random.normal(kb, (N, D), dtype=jnp.float32)

    for reg_both in (True, False):
        out = VICRegLoss(regularize_both=reg_both)(a, b)
        out = jax.tree_util.tree_map(jax.block_until_ready, out)
        ref = _vicreg_loss_ref(a, b, regularize_both=reg_both)
        for k in out:
            assert jnp.allclose(out[k], ref[k], rtol=1e-4, atol=1e-4), (
                k, reg_both, float(out[k]), float(ref[k]))

    # Non-128-multiple feature dim -> wrapper pads D, kernel masks the tail.
    a2 = jax.random.normal(ka, (8, 32), dtype=jnp.float32)
    b2 = a2 + 0.1 * jax.random.normal(kb, (8, 32), dtype=jnp.float32)
    out2 = VICRegLoss()(a2, b2)
    out2 = jax.tree_util.tree_map(jax.block_until_ready, out2)
    ref2 = _vicreg_loss_ref(a2, b2)
    for k in out2:
        assert jnp.allclose(out2[k], ref2[k], rtol=1e-4, atol=1e-4), (
            k, float(out2[k]), float(ref2[k]))

    # bf16 inputs exercise the native-dtype (bf16) MXU Gram path; looser tol.
    a3 = jax.random.normal(ka, (16, 256), dtype=jnp.float32).astype(jnp.bfloat16)
    b3 = (a3.astype(jnp.float32)
          + 0.1 * jax.random.normal(kb, (16, 256), dtype=jnp.float32)
          ).astype(jnp.bfloat16)
    out3 = VICRegLoss()(a3, b3)
    out3 = jax.tree_util.tree_map(jax.block_until_ready, out3)
    ref3 = _vicreg_loss_ref(a3, b3)
    for k in out3:
        assert jnp.allclose(out3[k], ref3[k], rtol=1e-1, atol=1e-1), (
            k, float(out3[k]), float(ref3[k]))

    print("KERNEL_OK")
</pallas_src>

<mosaic_0001>
module attributes {stable_mosaic.version = 11 : i64} {
  func.func @_vicreg_kernel(%arg0: i32, %arg1: memref<8x256xf32, #tpu.memory_space<vmem>>, %arg2: memref<8x256xf32, #tpu.memory_space<vmem>>, %arg3: memref<3xf32, #tpu.memory_space<smem>>, %arg4: memref<8x256xf32, #tpu.memory_space<vmem>>, %arg5: memref<16x16xf32, #tpu.memory_space<vmem>>, %arg6: memref<1x256xf32, #tpu.memory_space<vmem>>, %arg7: memref<1x256xf32, #tpu.memory_space<vmem>>, %arg8: memref<1x256xf32, #tpu.memory_space<vmem>>, %arg9: memref<1x256xf32, #tpu.memory_space<vmem>>) attributes {dimension_semantics = [#tpu.dimension_semantics<arbitrary>], iteration_bounds = array<i64: 1>, scalar_prefetch = 0 : i64, scratch_operands = 6 : i64, tpu.core_type = #tpu.core_type<tc>, window_params = [{transform_indices = @transform_0, window_bounds = array<i64: 8, 256>}, {transform_indices = @transform_1, window_bounds = array<i64: 8, 256>}, {transform_indices = @transform_2, window_bounds = array<i64: 3>}]} {
    %c0_i32 = arith.constant 0 : i32
    %0 = arith.cmpi eq, %arg0, %c0_i32 : i32
    %1 = arith.extui %0 : i1 to i32
    %c0_i32_0 = arith.constant 0 : i32
    %2 = arith.cmpi ne, %1, %c0_i32_0 : i32
    scf.if %2 {
      %cst_45 = arith.constant 0.000000e+00 : f32
      %70 = vector.broadcast %cst_45 : f32 to vector<8x256xf32>
      %c0_46 = arith.constant 0 : index
      %c0_47 = arith.constant 0 : index
      %71 = vector.load %arg4[%c0_46, %c0_47] : memref<8x256xf32, #tpu.memory_space<vmem>>, vector<8x256xf32>
      tpu.vector_store %arg4[%c0_46, %c0_47], %70 {strides = array<i32>} : memref<8x256xf32, #tpu.memory_space<vmem>>, vector<8x256xf32>,
      %cst_48 = arith.constant 0.000000e+00 : f32
      %72 = vector.broadcast %cst_48 : f32 to vector<16x16xf32>
      %c0_49 = arith.constant 0 : index
      %c0_50 = arith.constant 0 : index
      %73 = vector.load %arg5[%c0_49, %c0_50] : memref<16x16xf32, #tpu.memory_space<vmem>>, vector<16x16xf32>
      tpu.vector_store %arg5[%c0_49, %c0_50], %72 {strides = array<i32>} : memref<16x16xf32, #tpu.memory_space<vmem>>, vector<16x16xf32>,
      %cst_51 = arith.constant 0.000000e+00 : f32
      %74 = vector.broadcast %cst_51 : f32 to vector<1x256xf32>
      %c0_52 = arith.constant 0 : index
      %c0_53 = arith.constant 0 : index
      %75 = vector.load %arg6[%c0_52, %c0_53] : memref<1x256xf32, #tpu.memory_space<vmem>>, vector<1x256xf32>
      tpu.vector_store %arg6[%c0_52, %c0_53], %74 {strides = array<i32>} : memref<1x256xf32, #tpu.memory_space<vmem>>, vector<1x256xf32>,
      %cst_54 = arith.constant 0.000000e+00 : f32
      %76 = vector.broadcast %cst_54 : f32 to vector<1x256xf32>
      %c0_55 = arith.constant 0 : index
      %c0_56 = arith.constant 0 : index
      %77 = vector.load %arg7[%c0_55, %c0_56] : memref<1x256xf32, #tpu.memory_space<vmem>>, vector<1x256xf32>
      tpu.vector_store %arg7[%c0_55, %c0_56], %76 {strides = array<i32>} : memref<1x256xf32, #tpu.memory_space<vmem>>, vector<1x256xf32>,
      %cst_57 = arith.constant 0.000000e+00 : f32
      %78 = vector.broadcast %cst_57 : f32 to vector<1x256xf32>
      %c0_58 = arith.constant 0 : index
      %c0_59 = arith.constant 0 : index
      %79 = vector.load %arg8[%c0_58, %c0_59] : memref<1x256xf32, #tpu.memory_space<vmem>>, vector<1x256xf32>
      tpu.vector_store %arg8[%c0_58, %c0_59], %78 {strides = array<i32>} : memref<1x256xf32, #tpu.memory_space<vmem>>, vector<1x256xf32>,
      %cst_60 = arith.constant 0.000000e+00 : f32
      %80 = vector.broadcast %cst_60 : f32 to vector<1x256xf32>
      %c0_61 = arith.constant 0 : index
      %c0_62 = arith.constant 0 : index
      %81 = vector.load %arg9[%c0_61, %c0_62] : memref<1x256xf32, #tpu.memory_space<vmem>>, vector<1x256xf32>
      tpu.vector_store %arg9[%c0_61, %c0_62], %80 {strides = array<i32>} : memref<1x256xf32, #tpu.memory_space<vmem>>, vector<1x256xf32>,
    } else {
    }
    %c0 = arith.constant 0 : index
    %c0_1 = arith.constant 0 : index
    %3 = vector.load %arg1[%c0, %c0_1] : memref<8x256xf32, #tpu.memory_space<vmem>>, vector<8x256xf32>
    %c0_2 = arith.constant 0 : index
    %c0_3 = arith.constant 0 : index
    %4 = vector.load %arg2[%c0_2, %c0_3] : memref<8x256xf32, #tpu.memory_space<vmem>>, vector<8x256xf32>
    %5 = arith.subf %3, %4 : vector<8x256xf32>
    %6 = arith.mulf %5, %5 : vector<8x256xf32>
    %c0_4 = arith.constant 0 : index
    %c0_5 = arith.constant 0 : index
    %7 = vector.load %arg4[%c0_4, %c0_5] : memref<8x256xf32, #tpu.memory_space<vmem>>, vector<8x256xf32>
    %8 = vector.shape_cast %6 : vector<8x256xf32> to vector<1x8x256xf32>
    %cst = arith.constant dense<0.000000e+00> : vector<8x256xf32>
    %9 = vector.multi_reduction <add>, %8, %cst [0] : vector<1x8x256xf32> to vector<8x256xf32>
    %10 = arith.addf %7, %9 : vector<8x256xf32>
    %c0_6 = arith.constant 0 : index
    %c0_7 = arith.constant 0 : index
    %11 = vector.load %arg4[%c0_6, %c0_7] : memref<8x256xf32, #tpu.memory_space<vmem>>, vector<8x256xf32>
    tpu.vector_store %arg4[%c0_6, %c0_7], %10 {strides = array<i32>} : memref<8x256xf32, #tpu.memory_space<vmem>>, vector<8x256xf32>,
    %cst_8 = arith.constant dense<0.000000e+00> : vector<256xf32>
    %12 = vector.multi_reduction <add>, %3, %cst_8 [0] : vector<8x256xf32> to vector<256xf32>
    %13 = vector.shape_cast %12 : vector<256xf32> to vector<1x256xf32>
    %cst_9 = arith.constant 8.000000e+00 : f32
    %14 = vector.broadcast %cst_9 : f32 to vector<1x256xf32>
    %15 = arith.divf %13, %14 : vector<1x256xf32>
    %16 = vector.broadcast %15 : vector<1x256xf32> to vector<8x256xf32>
    %17 = arith.subf %3, %16 : vector<8x256xf32>
    %18 = arith.mulf %17, %17 : vector<8x256xf32>
    %cst_10 = arith.constant dense<0.000000e+00> : vector<256xf32>
    %19 = vector.multi_reduction <add>, %18, %cst_10 [0] : vector<8x256xf32> to vector<256xf32>
    %20 = vector.shape_cast %19 : vector<256xf32> to vector<1x256xf32>
    %cst_11 = arith.constant 0.142857149 : f32
    %21 = vector.broadcast %cst_11 : f32 to vector<1x256xf32>
    %22 = arith.mulf %20, %21 : vector<1x256xf32>
    %cst_12 = arith.constant 9.99999974E-5 : f32
    %23 = vector.broadcast %cst_12 : f32 to vector<1x256xf32>
    %24 = arith.addf %22, %23 : vector<1x256xf32>
    %25 = math.sqrt %24 : vector<1x256xf32>
    %cst_13 = arith.constant 1.000000e+00 : f32
    %26 = vector.broadcast %cst_13 : f32 to vector<1x256xf32>
    %27 = arith.subf %26, %25 : vector<1x256xf32>
    %cst_14 = arith.constant 0.000000e+00 : f32
    %28 = vector.broadcast %cst_14 : f32 to vector<1x256xf32>
    %29 = arith.maximumf %27, %28 : vector<1x256xf32>
    %c0_15 = arith.constant 0 : index
    %c0_16 = arith.constant 0 : index
    %30 = vector.load %arg6[%c0_15, %c0_16] : memref<1x256xf32, #tpu.memory_space<vmem>>, vector<1x256xf32>
    %31 = arith.addf %30, %29 : vector<1x256xf32>
    %c0_17 = arith.constant 0 : index
    %c0_18 = arith.constant 0 : index
    %32 = vector.load %arg6[%c0_17, %c0_18] : memref<1x256xf32, #tpu.memory_space<vmem>>, vector<1x256xf32>
    tpu.vector_store %arg6[%c0_17, %c0_18], %31 {strides = array<i32>} : memref<1x256xf32, #tpu.memory_space<vmem>>, vector<1x256xf32>,
    %c0_19 = arith.constant 0 : index
    %c0_20 = arith.constant 0 : index
    %33 = vector.load %arg7[%c0_19, %c0_20] : memref<1x256xf32, #tpu.memory_space<vmem>>, vector<1x256xf32>
    %34 = arith.mulf %22, %22 : vector<1x256xf32>
    %35 = arith.addf %33, %34 : vector<1x256xf32>
    %c0_21 = arith.constant 0 : index
    %c0_22 = arith.constant 0 : index
    %36 = vector.load %arg7[%c0_21, %c0_22] : memref<1x256xf32, #tpu.memory_space<vmem>>, vector<1x256xf32>
    tpu.vector_store %arg7[%c0_21, %c0_22], %35 {strides = array<i32>} : memref<1x256xf32, #tpu.memory_space<vmem>>, vector<1x256xf32>,
    %cst_23 = arith.constant dense<0.000000e+00> : vector<256xf32>
    %37 = vector.multi_reduction <add>, %4, %cst_23 [0] : vector<8x256xf32> to vector<256xf32>
    %38 = vector.shape_cast %37 : vector<256xf32> to vector<1x256xf32>
    %cst_24 = arith.constant 8.000000e+00 : f32
    %39 = vector.broadcast %cst_24 : f32 to vector<1x256xf32>
    %40 = arith.divf %38, %39 : vector<1x256xf32>
    %41 = vector.broadcast %40 : vector<1x256xf32> to vector<8x256xf32>
    %42 = arith.subf %4, %41 : vector<8x256xf32>
    %43 = arith.mulf %42, %42 : vector<8x256xf32>
    %cst_25 = arith.constant dense<0.000000e+00> : vector<256xf32>
    %44 = vector.multi_reduction <add>, %43, %cst_25 [0] : vector<8x256xf32> to vector<256xf32>
    %45 = vector.shape_cast %44 : vector<256xf32> to vector<1x256xf32>
    %cst_26 = arith.constant 0.142857149 : f32
    %46 = vector.broadcast %cst_26 : f32 to vector<1x256xf32>
    %47 = arith.mulf %45, %46 : vector<1x256xf32>
    %cst_27 = arith.constant 9.99999974E-5 : f32
    %48 = vector.broadcast %cst_27 : f32 to vector<1x256xf32>
    %49 = arith.addf %47, %48 : vector<1x256xf32>
    %50 = math.sqrt %49 : vector<1x256xf32>
    %cst_28 = arith.constant 1.000000e+00 : f32
    %51 = vector.broadcast %cst_28 : f32 to vector<1x256xf32>
    %52 = arith.subf %51, %50 : vector<1x256xf32>
    %cst_29 = arith.constant 0.000000e+00 : f32
    %53 = vector.broadcast %cst_29 : f32 to vector<1x256xf32>
    %54 = arith.maximumf %52, %53 : vector<1x256xf32>
    %c0_30 = arith.constant 0 : index
    %c0_31 = arith.constant 0 : index
    %55 = vector.load %arg8[%c0_30, %c0_31] : memref<1x256xf32, #tpu.memory_space<vmem>>, vector<1x256xf32>
    %56 = arith.addf %55, %54 : vector<1x256xf32>
    %c0_32 = arith.constant 0 : index
    %c0_33 = arith.constant 0 : index
    %57 = vector.load %arg8[%c0_32, %c0_33] : memref<1x256xf32, #tpu.memory_space<vmem>>, vector<1x256xf32>
    tpu.vector_store %arg8[%c0_32, %c0_33], %56 {strides = array<i32>} : memref<1x256xf32, #tpu.memory_space<vmem>>, vector<1x256xf32>,
    %c0_34 = arith.constant 0 : index
    %c0_35 = arith.constant 0 : index
    %58 = vector.load %arg9[%c0_34, %c0_35] : memref<1x256xf32, #tpu.memory_space<vmem>>, vector<1x256xf32>
    %59 = arith.mulf %47, %47 : vector<1x256xf32>
    %60 = arith.addf %58, %59 : vector<1x256xf32>
    %c0_36 = arith.constant 0 : index
    %c0_37 = arith.constant 0 : index
    %61 = vector.load %arg9[%c0_36, %c0_37] : memref<1x256xf32, #tpu.memory_space<vmem>>, vector<1x256xf32>
    tpu.vector_store %arg9[%c0_36, %c0_37], %60 {strides = array<i32>} : memref<1x256xf32, #tpu.memory_space<vmem>>, vector<1x256xf32>,
    %62 = tpu.concatenate %17, %42 in 0 : vector<8x256xf32>, vector<8x256xf32> -> vector<16x256xf32>
    %c0_38 = arith.constant 0 : index
    %c0_39 = arith.constant 0 : index
    %63 = vector.load %arg5[%c0_38, %c0_39] : memref<16x16xf32, #tpu.memory_space<vmem>>, vector<16x16xf32>
    %cst_40 = arith.constant dense<0.000000e+00> : vector<16x16xf32>
    %64 = tpu.matmul %62, %62, %cst_40 {dimension_numbers = #tpu.dot_dimension_numbers<[1], [1], [0], [0], [0, 0, 1, 0], [], []>} : vector<16x256xf32>, vector<16x256xf32>, vector<16x16xf32> -> vector<16x16xf32>
    %65 = arith.addf %63, %64 : vector<16x16xf32>
    %c0_41 = arith.constant 0 : index
    %c0_42 = arith.constant 0 : index
    %66 = vector.load %arg5[%c0_41, %c0_42] : memref<16x16xf32, #tpu.memory_space<vmem>>, vector<16x16xf32>
    tpu.vector_store %arg5[%c0_41, %c0_42], %65 {strides = array<i32>} : memref<16x16xf32, #tpu.memory_space<vmem>>, vector<16x16xf32>,
    %c0_i32_43 = arith.constant 0 : i32
    %67 = arith.cmpi eq, %arg0, %c0_i32_43 : i32
    %68 = arith.extui %67 : i1 to i32
    %c0_i32_44 = arith.constant 0 : i32
    %69 = arith.cmpi ne, %68, %c0_i32_44 : i32
    scf.if %69 {
      %c0_45 = arith.constant 0 : index
      %c0_46 = arith.constant 0 : index
      %70 = vector.load %arg4[%c0_45, %c0_46] : memref<8x256xf32, #tpu.memory_space<vmem>>, vector<8x256xf32>
      %71 = vector.shape_cast %70 : vector<8x256xf32> to vector<1x8x256xf32>
      %cst_47 = arith.constant dense<0.000000e+00> : vector<1xf32>
      %72 = vector.multi_reduction <add>, %71, %cst_47 [1, 2] : vector<1x8x256xf32> to vector<1xf32>
      %73 = vector.shape_cast %72 : vector<1xf32> to vector<1x1x1xf32>
      %74 = vector.extract %73[0, 0, 0] : f32 from vector<1x1x1xf32>
      %cst_48 = arith.constant 4.8828125E-4 : f32
      %75 = arith.mulf %74, %cst_48 : f32
      %c0_49 = arith.constant 0 : index
      %c0_50 = arith.constant 0 : index
      %76 = vector.load %arg5[%c0_49, %c0_50] : memref<16x16xf32, #tpu.memory_space<vmem>>, vector<16x16xf32>
      %77 = vector.extract_strided_slice %76 {offsets = [0, 0], sizes = [8, 8], strides = [1, 1]} : vector<16x16xf32> to vector<8x8xf32>
      %78 = arith.mulf %77, %77 : vector<8x8xf32>
      %79 = vector.shape_cast %78 : vector<8x8xf32> to vector<1x8x8xf32>
      %cst_51 = arith.constant dense<0.000000e+00> : vector<1xf32>
      %80 = vector.multi_reduction <add>, %79, %cst_51 [1, 2] : vector<1x8x8xf32> to vector<1xf32>
      %81 = vector.shape_cast %80 : vector<1xf32> to vector<1x1x1xf32>
      %82 = vector.extract %81[0, 0, 0] : f32 from vector<1x1x1xf32>
      %cst_52 = arith.constant 0.0204081628 : f32
      %83 = arith.mulf %82, %cst_52 : f32
      %84 = vector.extract_strided_slice %76 {offsets = [8, 8], sizes = [8, 8], strides = [1, 1]} : vector<16x16xf32> to vector<8x8xf32>
      %85 = arith.mulf %84, %84 : vector<8x8xf32>
      %86 = vector.shape_cast %85 : vector<8x8xf32> to vector<1x8x8xf32>
      %cst_53 = arith.constant dense<0.000000e+00> : vector<1xf32>
      %87 = vector.multi_reduction <add>, %86, %cst_53 [1, 2] : vector<1x8x8xf32> to vector<1xf32>
      %88 = vector.shape_cast %87 : vector<1xf32> to vector<1x1x1xf32>
      %89 = vector.extract %88[0, 0, 0] : f32 from vector<1x1x1xf32>
      %cst_54 = arith.constant 0.0204081628 : f32
      %90 = arith.mulf %89, %cst_54 : f32
      %c0_55 = arith.constant 0 : index
      %c0_56 = arith.constant 0 : index
      %91 = vector.load %arg6[%c0_55, %c0_56] : memref<1x256xf32, #tpu.memory_space<vmem>>, vector<1x256xf32>
      %92 = vector.shape_cast %91 : vector<1x256xf32> to vector<1x1x256xf32>
      %cst_57 = arith.constant dense<0.000000e+00> : vector<1xf32>
      %93 = vector.multi_reduction <add>, %92, %cst_57 [1, 2] : vector<1x1x256xf32> to vector<1xf32>
      %94 = vector.shape_cast %93 : vector<1xf32> to vector<1x1x1xf32>
      %95 = vector.extract %94[0, 0, 0] : f32 from vector<1x1x1xf32>
      %c0_58 = arith.constant 0 : index
      %c0_59 = arith.constant 0 : index
      %96 = vector.load %arg7[%c0_58, %c0_59] : memref<1x256xf32, #tpu.memory_space<vmem>>, vector<1x256xf32>
      %97 = vector.shape_cast %96 : vector<1x256xf32> to vector<1x1x256xf32>
      %cst_60 = arith.constant dense<0.000000e+00> : vector<1xf32>
      %98 = vector.multi_reduction <add>, %97, %cst_60 [1, 2] : vector<1x1x256xf32> to vector<1xf32>
      %99 = vector.shape_cast %98 : vector<1xf32> to vector<1x1x1xf32>
      %100 = vector.extract %99[0, 0, 0] : f32 from vector<1x1x1xf32>
      %101 = arith.subf %83, %100 : f32
      %c0_61 = arith.constant 0 : index
      %c0_62 = arith.constant 0 : index
      %102 = vector.load %arg8[%c0_61, %c0_62] : memref<1x256xf32, #tpu.memory_space<vmem>>, vector<1x256xf32>
      %103 = vector.shape_cast %102 : vector<1x256xf32> to vector<1x1x256xf32>
      %cst_63 = arith.constant dense<0.000000e+00> : vector<1xf32>
      %104 = vector.multi_reduction <add>, %103, %cst_63 [1, 2] : vector<1x1x256xf32> to vector<1xf32>
      %105 = vector.shape_cast %104 : vector<1xf32> to vector<1x1x1xf32>
      %106 = vector.extract %105[0, 0, 0] : f32 from vector<1x1x1xf32>
      %107 = arith.addf %95, %106 : f32
      %c0_64 = arith.constant 0 : index
      %c0_65 = arith.constant 0 : index
      %108 = vector.load %arg9[%c0_64, %c0_65] : memref<1x256xf32, #tpu.memory_space<vmem>>, vector<1x256xf32>
      %109 = vector.shape_cast %108 : vector<1x256xf32> to vector<1x1x256xf32>
      %cst_66 = arith.constant dense<0.000000e+00> : vector<1xf32>
      %110 = vector.multi_reduction <add>, %109, %cst_66 [1, 2] : vector<1x1x256xf32> to vector<1xf32>
      %111 = vector.shape_cast %110 : vector<1xf32> to vector<1x1x1xf32>
      %112 = vector.extract %111[0, 0, 0] : f32 from vector<1x1x1xf32>
      %113 = arith.subf %90, %112 : f32
      %114 = arith.addf %101, %113 : f32
      %cst_67 = arith.constant 2.500000e+01 : f32
      %115 = arith.mulf %cst_67, %75 : f32
      %c0_68 = arith.constant 0 : index
      %116 = memref.load %arg3[%c0_68] : memref<3xf32, #tpu.memory_space<smem>>
      memref.store %115, %arg3[%c0_68] : memref<3xf32, #tpu.memory_space<smem>>
      %cst_69 = arith.constant 3.906250e-03 : f32
      %117 = arith.mulf %107, %cst_69 : f32
      %cst_70 = arith.constant 2.500000e+01 : f32
      %118 = arith.mulf %cst_70, %117 : f32
      %c1 = arith.constant 1 : index
      %119 = memref.load %arg3[%c1] : memref<3xf32, #tpu.memory_space<smem>>
      memref.store %118, %arg3[%c1] : memref<3xf32, #tpu.memory_space<smem>>
      %cst_71 = arith.constant 3.906250e-03 : f32
      %120 = arith.mulf %114, %cst_71 : f32
      %cst_72 = arith.constant 1.000000e+00 : f32
      %121 = arith.mulf %cst_72, %120 : f32
      %c2 = arith.constant 2 : index
      %122 = memref.load %arg3[%c2] : memref<3xf32, #tpu.memory_space<smem>>
      memref.store %121, %arg3[%c2] : memref<3xf32, #tpu.memory_space<smem>>
    } else {
    }
    return
  }
  func.func @transform_0(%arg0: i32) -> (i32, i32) {
    %c0_i32 = arith.constant 0 : i32
    %c0_i32_0 = arith.constant 0 : i32
    return %c0_i32, %arg0 : i32, i32
  }
  func.func @transform_1(%arg0: i32) -> (i32, i32) {
    %c0_i32 = arith.constant 0 : i32
    %c0_i32_0 = arith.constant 0 : i32
    return %c0_i32, %arg0 : i32, i32
  }
  func.func @transform_2(%arg0: i32) -> i32 {
    %c0_i32 = arith.constant 0 : i32
    %c0_i32_0 = arith.constant 0 : i32
    return %c0_i32 : i32
  }
}

</mosaic_0001>

<bundles_post_ra>
// kernel: tpu_custom_call.1
= control target key start
LH: loop header
LB: loop body
LE: loop exit
PB: predicated region body
PF: predicated region fallthrough
CT: control target
= control target key end

     0   :  { %7 = vsyncpa [#allocation9], 0  ;;  %s750_s0 = inlined_call_operand.hbm [shape: f32[8,256], index: 0, kind: input, shape index: {}]   ;;  %s751_s1 = inlined_call_operand.hbm [shape: f32[8,256], index: 1, kind: input, shape index: {}]   ;;  %s752_s2 = inlined_call_operand.hbm [shape: f32[3], index: 2, kind: output, shape index: {}]  }
   0x1   :  { %8 = vsyncpa [#allocation12], 0 }
   0x2   :  { %9 = vsyncpa [#allocation10], 0  ;;  %s615_s9 = smov [#allocation8]   ;;  %s616_s11 = smov [#allocation11]  }
   0x3   :  { %s16_s10 = sshll.u32 %s615_s9, 4  ;;  %s26_s12 = sshll.u32 %s616_s11, 4  ;;  %s17_s10 = int_to_ptr.vmem [resolvable:$true] %s16_s10  ;;  %s27_s12 = int_to_ptr.vmem [resolvable:$true] %s26_s12 }
   0x4   :  { %s555_s15 = scalar_lea.hbm %s750_s0, 256 }
   0x5   :  { %p556_p0 = scmp.ne.s32.totalorder %s750_s0, %s555_s15  ;;  %p559_p1 = scmp.lt.u32.totalorder %s555_s15, %s750_s0 }
   0x7   :  { %p561_p2 = pnand %p559_p1, %p556_p0 }
   0x9   :  { %564 = shalt.err (!%p561_p2)
}
   0xa   :  { %s565_s20 = scalar_lea.vmem %s17_s10, 256  ;;  %p570_p4 = scmp.lt.s32.totalorder %s17_s10, %s17_s10 }
   0xb   :  { %p566_p3 = scmp.ne.s32.totalorder %s17_s10, %s565_s20  ;;  %p571_p5 = scmp.lt.s32.totalorder %s565_s20, %s565_s20 }
   0xd   :  { %p572_p6 = por %p571_p5, %p570_p4 }
   0xf   :  { %p573_p7 = pnand %p572_p6, %p566_p3 }
  0x11   :  { %576 = shalt.err (!%p573_p7)
}
  0x12   :  { %19 = dma.hbm_to_vmem [thread:$0]  %s750_s0, 256, %s17_s10, [#allocation9]  }
  0x13   :  { %s577_s25 = scalar_lea.hbm %s751_s1, 256 }
  0x14   :  { %p578_p8 = scmp.ne.s32.totalorder %s751_s1, %s577_s25  ;;  %p581_p9 = scmp.lt.u32.totalorder %s577_s25, %s751_s1 }
  0x16   :  { %p583_p10 = pnand %p581_p9, %p578_p8 }
  0x18   :  { %586 = shalt.err (!%p583_p10)
}
  0x19   :  { %s587_s30 = scalar_lea.vmem %s27_s12, 256  ;;  %p592_p12 = scmp.lt.s32.totalorder %s27_s12, %s27_s12 }
  0x1a   :  { %p588_p11 = scmp.ne.s32.totalorder %s27_s12, %s587_s30  ;;  %p593_p13 = scmp.lt.s32.totalorder %s587_s30, %s587_s30 }
  0x1c   :  { %p594_p0 = por %p593_p13, %p592_p12 }
  0x1e   :  { %p595_p1 = pnand %p594_p0, %p588_p11 }
  0x20   :  { %598 = shalt.err (!%p595_p1)
}
  0x21   :  { %29 = dma.hbm_to_vmem [thread:$0]  %s751_s1, 256, %s27_s12, [#allocation12]  }
  0x22   :  { %609 = dma.done.wait [#allocation9], 256  }
  0x23   :  { %610 = vsyncadd [#allocation9], 4294967040 }
  0x24   :  { %611 = dma.done.wait [#allocation12], 256  }
  0x25   :  { %612 = vsyncadd [#allocation12], 4294967040  ;;  %vm42_vm0 = vcmask 130048   ;;  %v617_v0 = vmov 0.0   ;;  %v664_v1 = vld [vmem:[#allocation8 + $0x8] sm:$0xff]  ;;  %v666_v2 = vld [vmem:[#allocation11 + $0x8] sm:$0xff] }
  0x26   :  { %44 = vst.msk [vmem:[#allocation3 + $0x8] sm:$0xff] %vm42_vm0, %v617_v0  ;;  %43 = vst.msk [vmem:[#allocation3] sm:$0xff] %vm42_vm0, %v617_v0  ;;  %v668_v3 = vld [vmem:[#allocation8] sm:$0xff]  ;;  %v75_v4 = vrot.slane %v664_v1, 4  ;;  %v176_v5 = vrot.slane %v666_v2, 4  ;;  %v672_v6 = vld [vmem:[#allocation11] sm:$0xff] }
  0x27   :  { %v69_v7 = vrot.slane %v668_v3, 4  ;;  %v170_v8 = vrot.slane %v672_v6, 4  ;;  %vm407_vm10 = vcmask 1040384   ;;  %vm367_vm11 = vcmask 64512   ;;  %s619_s1 = smov 120   ;;  %s599_s24 = scalar_lea.hbm %s752_s2, 16 }
  0x28   :  { %v76_v9 = vadd.f32 %v75_v4, %v664_v1  ;;  %v177_v10 = vadd.f32 %v176_v5, %v666_v2  ;;  %p600_p2 = scmp.ne.s32.totalorder %s752_s2, %s599_s24  ;;  %p603_p3 = scmp.lt.u32.totalorder %s599_s24, %s752_s2 }
  0x29   :  { %v70_v11 = vadd.f32 %v69_v7, %v668_v3  ;;  %v171_v12 = vadd.f32 %v170_v8, %v672_v6 }
  0x2a   :  { %v77_v13 = vrot.slane %v76_v9, 2  ;;  %v178_v14 = vrot.slane %v177_v10, 2  ;;  %p605_p4 = pnand %p603_p3, %p600_p2 }
  0x2b   :  { %v71_v15 = vrot.slane %v70_v11, 2  ;;  %v172_v16 = vrot.slane %v171_v12, 2 }
  0x2c   :  { %v78_v17 = vadd.f32 %v77_v13, %v76_v9  ;;  %v179_v18 = vadd.f32 %v178_v14, %v177_v10 }
  0x2d   :  { %v72_v19 = vadd.f32 %v71_v15, %v70_v11  ;;  %v173_v20 = vadd.f32 %v172_v16, %v171_v12 }
  0x2e   :  { %v79_v21 = vrot.slane %v78_v17, 1  ;;  %v180_v22 = vrot.slane %v179_v18, 1 }
  0x2f   :  { %v73_v23 = vrot.slane %v72_v19, 1  ;;  %v174_v24 = vrot.slane %v173_v20, 1 }
  0x30   :  { %v80_v25 = vadd.f32 %v79_v21, %v78_v17  ;;  %v181_v26 = vadd.f32 %v180_v22, %v179_v18 }
  0x31   :  { %v74_v27 = vadd.f32 %v73_v23, %v72_v19  ;;  %v175_v28 = vadd.f32 %v174_v24, %v173_v20 }
  0x32   :  { %v83_v29 = vmul.f32 0.125, %v80_v25  ;;  %v183_v30 = vmul.f32 0.125, %v181_v26 }
  0x33   :  { %v82_v31 = vmul.f32 0.125, %v74_v27  ;;  %v182_v32 = vmul.f32 0.125, %v175_v28 }
  0x34   :  { %v85_v33 = vsub.f32 %v664_v1, %v83_v29  ;;  %v185_v34 = vsub.f32 %v666_v2, %v183_v30 }
  0x35   :  { %v84_v35 = vsub.f32 %v668_v3, %v82_v31  ;;  %v184_v36 = vsub.f32 %v672_v6, %v182_v32 }
  0x36   :  { %v87_v37 = vmul.f32 %v85_v33, %v85_v33  ;;  %v187_v38 = vmul.f32 %v185_v34, %v185_v34  ;;  %v521_v39 = vpack.c.bf16 %v185_v34, %v85_v33  ;;  %337 = vmatprep.mubr.f32.mxu1 %v185_v34  ;;  %332 = vmatprep.mubr.f32.mxu0 %v85_v33 }
  0x37   :  { %v86_v40 = vmul.f32 %v84_v35, %v84_v35  ;;  %v186_v41 = vmul.f32 %v184_v36, %v184_v36  ;;  %v523_v42 = vpack.c.bf16 %v184_v36, %v84_v35 }
  0x38   :  { %v94_v43 = vrot.slane %v87_v37, 4  ;;  %v194_v44 = vrot.slane %v187_v38, 4  ;;  %525 = vmatprep.subr.bf16.mxu1 %v521_v39  ;;  %522 = vmatprep.subr.bf16.mxu0 %v521_v39 }
  0x39   :  { %v88_v45 = vrot.slane %v86_v40, 4  ;;  %v188_v46 = vrot.slane %v186_v41, 4  ;;  %526 = vmatpush1.bf16.xpose.msra.mxu1 %v523_v42  ;;  %524 = vmatpush1.bf16.xpose.msra.mxu0 %v523_v42 }
  0x3a   :  { %v95_v47 = vadd.f32 %v94_v43, %v87_v37  ;;  %v195_v48 = vadd.f32 %v194_v44, %v187_v38 }
  0x3b   :  { %v89_v49 = vadd.f32 %v88_v45, %v86_v40  ;;  %v189_v50 = vadd.f32 %v188_v46, %v186_v41 }
  0x3c   :  { %v96_v51 = vrot.slane %v95_v47, 2  ;;  %v196_v52 = vrot.slane %v195_v48, 2 }
  0x3d   :  { %v90_v53 = vrot.slane %v89_v49, 2  ;;  %v190_v54 = vrot.slane %v189_v50, 2 }
  0x3e   :  { %v97_v55 = vadd.f32 %v96_v51, %v95_v47  ;;  %v197_v56 = vadd.f32 %v196_v52, %v195_v48  ;;  %v45_v52 = vlaneseq }
  0x3f   :  { %v91_v57 = vadd.f32 %v90_v53, %v89_v49  ;;  %v191_v58 = vadd.f32 %v190_v54, %v189_v50  ;;  %v618_v53 = vmov 1966171168  }
  0x40   :  { %v98_v59 = vrot.slane %v97_v55, 1  ;;  %v198_v60 = vrot.slane %v197_v56, 1  ;;  %338 = vmatmul.mubr.f32.vlgmr.msra.gmra.mrb[0].mxu1 %v184_v36  ;;  %333 = vmatmul.mubr.f32.vlgmr.msra.gmra.mrb[0].mxu0 %v84_v35  ;;  %v127_v54 = vunpack.c.l.s4 %v618_v53  ;;  %vm695_vm9 = vcmp.lt.s32.totalorder %v45_v52, 256 }
  0x41   :  { %v92_v61 = vrot.slane %v91_v57, 1  ;;  %v192_v62 = vrot.slane %v191_v58, 1  ;;  %49 = vst.msk [vmem:[#allocation4] sm:$0x3] %vm695_vm9, %v617_v0  ;;  %50 = vst.msk [vmem:[#allocation5] sm:$0x3] %vm695_vm9, %v617_v0 }
  0x42   :  { %v99_v63 = vadd.f32 %v98_v59, %v97_v55  ;;  %v199_v4 = vadd.f32 %v198_v60, %v197_v56  ;;  %v130_v56 = vshrl.u32 %v45_v52, 7  ;;  %51 = vst.msk [vmem:[#allocation6] sm:$0x3] %vm695_vm9, %v617_v0  ;;  %52 = vst.msk [vmem:[#allocation7] sm:$0x3] %vm695_vm9, %v617_v0 }
  0x43   :  { %v93_v5 = vadd.f32 %v92_v61, %v91_v57  ;;  %v193_v7 = vadd.f32 %v192_v62, %v191_v58  ;;  %v128_v57 = vunpack.c.0.s8 %v127_v54 }
  0x44   :  { %v101_v8 = vmul.f32 0.14285715, %v99_v63  ;;  %v201_v9 = vmul.f32 0.14285715, %v199_v4  ;;  %v399_v0 = vsub.s32 0, %v130_v56 }
  0x45   :  { %v100_v10 = vmul.f32 0.14285715, %v93_v5  ;;  %v200_v11 = vmul.f32 0.14285715, %v193_v7  ;;  %v131_v58 = vsub.s32 %v128_v57, %v130_v56 }
  0x46   :  { %v103_v12 = vadd.f32 0.0001, %v101_v8  ;;  %v203_v13 = vadd.f32 0.0001, %v201_v9  ;;  %v684_v14 = vmul.f32 %v101_v8, %v101_v8  ;;  %v686_v18 = vmul.f32 %v201_v9, %v201_v9 }
  0x47   :  { %v102_v15 = vadd.f32 0.0001, %v100_v10  ;;  %v148_v16 = vmul.f32 %v100_v10, %v100_v10  ;;  %v202_v17 = vadd.f32 0.0001, %v200_v11  ;;  %v688_v19 = vmul.f32 %v200_v11, %v200_v11 }
  0x48   :  { %547 = vrsqrt.f32 %v103_v12  ;;  %vm113_vm1 = vcmp.eq.f32.partialorder %v103_v12, inf  ;;  %vm115_vm2 = vcmp.eq.f32.partialorder %v103_v12, 0.0  ;;  %v116_v23 = vand.u32 2147483648, %v103_v12  ;;  %v122_v5 = vld [vmem:[#allocation4] sm:$0x3] }
  0x49   :  { %549 = vrsqrt.f32 %v203_v13  ;;  %v152_v20 = vcombine.low %v148_v16, %v684_v14  ;;  %v248_v21 = vcombine.low %v688_v19, %v686_v18  ;;  %vm213_vm3 = vcmp.eq.f32.partialorder %v203_v13, inf  ;;  %v222_v7 = vld [vmem:[#allocation6] sm:$0x3]  ;;  %v147_v8 = vld [vmem:[#allocation5] sm:$0x3] }
  0x4a   :  { %551 = vrsqrt.f32 %v102_v15  ;;  %vm215_vm4 = vcmp.eq.f32.partialorder %v203_v13, 0.0  ;;  %v216_v26 = vand.u32 2147483648, %v203_v13  ;;  %vm106_vm5 = vcmp.eq.f32.partialorder %v102_v15, inf }
  0x4b   :  { %553 = vrsqrt.f32 %v202_v17  ;;  %vm108_vm6 = vcmp.eq.f32.partialorder %v102_v15, 0.0  ;;  %v109_v29 = vand.u32 2147483648, %v102_v15  ;;  %vm206_vm7 = vcmp.eq.f32.partialorder %v202_v17, inf }
  0x4c   :  { %v209_v33 = vand.u32 2147483648, %v202_v17  ;;  %vm208_vm8 = vcmp.eq.f32.partialorder %v202_v17, 0.0  ;;  %v159_v60 = vrot.slane %v152_v20, %v131_v58 }
  0x4e   :  { %v166_v4 = vrot.slane %v159_v60, %v131_v58 }
  0x50   :  { %v168_v11 = vadd.f32 %v166_v4, %v147_v8 }
  0x52   :  { %v548_v22 = vpop.eup %547  ;;  %169 = vst.msk [vmem:[#allocation5] sm:$0x3] %vm695_vm9, %v168_v11 }
  0x53   :  { %v550_v24 = vpop.eup %549  ;;  %v112_v25 = vmul.f32 %v548_v22, %v103_v12 }
  0x54   :  { %v552_v27 = vpop.eup %551  ;;  %v212_v28 = vmul.f32 %v550_v24, %v203_v13 }
  0x55   :  { %v554_v30 = vpop.eup %553  ;;  %v114_v31 = vsel %vm113_vm1, %v103_v12, %v112_v25  ;;  %v105_v32 = vmul.f32 %v552_v27, %v102_v15  ;;  %v403_v12 = vsub.s32 1, %v130_v56 }
  0x56   :  { %v117_v34 = vsel %vm115_vm2, %v116_v23, %v114_v31  ;;  %v214_v35 = vsel %vm213_vm3, %v203_v13, %v212_v28  ;;  %v205_v36 = vmul.f32 %v554_v30, %v202_v17 }
  0x57   :  { %v119_v37 = vsub.f32 1.0, %v117_v34  ;;  %v217_v38 = vsel %vm215_vm4, %v216_v26, %v214_v35  ;;  %v107_v39 = vsel %vm106_vm5, %v102_v15, %v105_v32  ;;  %v255_v34 = vrot.slane %v248_v21, %v131_v58 }
  0x58   :  { %v219_v40 = vsub.f32 1.0, %v217_v38  ;;  %v110_v41 = vsel %vm108_vm6, %v109_v29, %v107_v39  ;;  %v207_v42 = vsel %vm206_vm7, %v202_v17, %v205_v36  ;;  %v243_v36 = vld [vmem:[#allocation7] sm:$0x3]  ;;  %v267_v38 = vld [vmem:[#allocation3 + $0x8] sm:$0xff]  ;;  %v266_v39 = vld [vmem:[#allocation3] sm:$0xff] }
  0x59   :  { %v121_v43 = vmax.f32 %v119_v37, 0.0  ;;  %v118_v44 = vsub.f32 1.0, %v110_v41  ;;  %v210_v45 = vsel %vm208_vm8, %v209_v33, %v207_v42  ;;  %v420_v14 = vld [vmem:[#allocation5] sm:$0x3]  ;;  %v262_v35 = vrot.slane %v255_v34, %v131_v58 }
  0x5a   :  { %v221_v46 = vmax.f32 %v219_v40, 0.0  ;;  %v218_v47 = vsub.f32 1.0, %v210_v45  ;;  %v425_v20 = vrot.slane %v420_v14, %v399_v0  ;;  %v429_v22 = vrot.slane %v420_v14, %v403_v12 }
  0x5b   :  { %v120_v48 = vmax.f32 %v118_v44, 0.0  ;;  %v264_v37 = vadd.f32 %v262_v35, %v243_v36 }
  0x5c   :  { %v220_v49 = vmax.f32 %v218_v47, 0.0  ;;  %v432_v27 = vsel %vm407_vm10, %v425_v20, 0.0  ;;  %v433_v28 = vsel %vm407_vm10, %v429_v22, 0.0 }
  0x5d   :  { %v125_v50 = vcombine.low %v120_v48, %v121_v43  ;;  %v434_v30 = vadd.f32 %v433_v28, %v432_v27  ;;  %265 = vst.msk [vmem:[#allocation7] sm:$0x3] %vm695_vm9, %v264_v37  ;;  %v57_v48 = vsub.f32 %v668_v3, %v672_v6 }
  0x5e   :  { %v225_v51 = vcombine.low %v220_v49, %v221_v46  ;;  %v58_v49 = vsub.f32 %v664_v1, %v666_v2 }
  0x5f   :  { %v132_v59 = vrot.slane %v125_v50, %v131_v58  ;;  %v59_v50 = vmul.f32 %v57_v48, %v57_v48 }
  0x60   :  { %v232_v61 = vrot.slane %v225_v51, %v131_v58  ;;  %v60_v51 = vmul.f32 %v58_v49, %v58_v49 }
  0x61   :  { %v139_v62 = vrot.slane %v132_v59, %v131_v58 }
  0x62   :  { %v239_v63 = vrot.slane %v232_v61, %v131_v58  ;;  %v353_v52 = vadd.f32 %v60_v51, %v59_v50 }
  0x63   :  { %v141_v9 = vadd.f32 %v139_v62, %v122_v5 }
  0x64   :  { %v241_v10 = vadd.f32 %v239_v63, %v222_v7  ;;  %v470_v53 = vld [vmem:[#allocation7] sm:$0x3] }
  0x65   :  { %146 = vst.msk [vmem:[#allocation4] sm:$0x3] %vm695_vm9, %v141_v9  ;;  %v475_v54 = vrot.slane %v470_v53, %v399_v0  ;;  %v479_v55 = vrot.slane %v470_v53, %v403_v12 }
  0x66   :  { %242 = vst.msk [vmem:[#allocation6] sm:$0x3] %vm695_vm9, %v241_v10 }
  0x67   :  { %v482_v56 = vsel %vm407_vm10, %v475_v54, 0.0  ;;  %v483_v57 = vsel %vm407_vm10, %v479_v55, 0.0 }
  0x68   :  { %v484_v60 = vadd.f32 %v483_v57, %v482_v56 }
  0x6c   :  { %v395_v13 = vld [vmem:[#allocation4] sm:$0x3] }
  0x6d   :  { %v445_v15 = vld [vmem:[#allocation6] sm:$0x3]  ;;  %v400_v16 = vrot.slane %v395_v13, %v399_v0  ;;  %v404_v17 = vrot.slane %v395_v13, %v403_v12 }
  0x6e   :  { %v450_v23 = vrot.slane %v445_v15, %v399_v0  ;;  %v454_v24 = vrot.slane %v445_v15, %v403_v12 }
  0x6f   :  { %v408_v25 = vsel %vm407_vm10, %v400_v16, 0.0  ;;  %v409_v26 = vsel %vm407_vm10, %v404_v17, 0.0 }
  0x70   :  { %v410_v29 = vadd.f32 %v409_v26, %v408_v25  ;;  %v457_v31 = vsel %vm407_vm10, %v450_v23, 0.0  ;;  %v458_v32 = vsel %vm407_vm10, %v454_v24, 0.0 }
  0x71   :  { %v459_v33 = vadd.f32 %v458_v32, %v457_v31 }
  0x72   :  { %411 = vadd.xlane.f32.xlu1 %v410_v29 }
  0x76   :  { %435 = vadd.xlane.f32.xlu1 %v434_v30 }
  0x7a   :  { %460 = vadd.xlane.f32.xlu1 %v459_v33 }
  0xff   :  { %v412_v3 = vpop.xlane.xlu1 %411 }
 0x100   :  { %v413_v14 = vrot.slane %v412_v3, 4 }
 0x102   :  { %v414_v17 = vadd.f32 %v413_v14, %v412_v3 }
 0x103   :  { %v436_v6 = vpop.xlane.xlu1 %435 }
 0x104   :  { %v437_v15 = vrot.slane %v436_v6, 4  ;;  %v415_v23 = vrot.slane %v414_v17, 2 }
 0x106   :  { %v438_v20 = vadd.f32 %v437_v15, %v436_v6  ;;  %v416_v30 = vadd.f32 %v415_v23, %v414_v17 }
 0x107   :  { %v461_v1 = vpop.xlane.xlu1 %460 }
 0x108   :  { %v462_v16 = vrot.slane %v461_v1, 4  ;;  %v439_v25 = vrot.slane %v438_v20, 2  ;;  %v417_v37 = vrot.slane %v416_v30, 1 }
 0x10a   :  { %v463_v22 = vadd.f32 %v462_v16, %v461_v1  ;;  %v440_v33 = vadd.f32 %v439_v25, %v438_v20 }
 0x10c   :  { %v464_v27 = vrot.slane %v463_v22, 2 }
 0x10e   :  { %v465_v34 = vadd.f32 %v464_v27, %v463_v22 }
 0x113   :  { %v339_v40 = vpop.f32.mrb[0].mxu1  ;;  %v334_v41 = vpop.f32.mrb[0].mxu0 }
 0x114   :  { %v344_v42 = vadd.f32 %v339_v40, %v267_v38  ;;  %v341_v43 = vpop.f32.mrb[1].mxu1  ;;  %v343_v44 = vadd.f32 %v334_v41, %v266_v39  ;;  %v336_v45 = vpop.f32.mrb[1].mxu0  ;;  %v441_v40 = vrot.slane %v440_v33, 1  ;;  %v466_v41 = vrot.slane %v465_v34, 1 }
 0x116   :  { %347 = vst.msk [vmem:[#allocation3 + $0x8] sm:$0xff] %vm42_vm0, %v344_v42  ;;  %346 = vst.msk [vmem:[#allocation3] sm:$0xff] %vm42_vm0, %v343_v44  ;;  %v418_v44 = vadd.f32 %v417_v37, %v416_v30  ;;  %v442_v45 = vadd.f32 %v441_v40, %v440_v33 }
 0x11d   :  { %v365_v18 = vld [vmem:[#allocation3 + $0x8] sm:$0xff]  ;;  %v364_v19 = vld [vmem:[#allocation3] sm:$0xff] }
 0x11e   :  { %v379_v21 = vmul.f32 %v365_v18, %v365_v18  ;;  %v366_v46 = vmul.f32 %v364_v19, %v364_v19  ;;  %v467_v19 = vadd.f32 %v466_v41, %v465_v34 }
 0x120   :  { %381 = vrot.lane.b32.xlu0 %v379_v21, %s619_s1  ;;  %v368_v47 = vsel %vm367_vm11, %v366_v46, 0.0 }
 0x121   :  { %369 = vadd.xlane.f32.xlu1 %v368_v47 }
 0x13f   :  { %354 = vadd.xlane.f32.xlu0 %v353_v52 }
 0x192   :  { %v382_v58 = vpop.permute.xlu0 %381 }
 0x193   :  { %v384_v59 = vsel %vm367_vm11, %v382_v58, 0.0 }
 0x194   :  { %385 = vadd.xlane.f32.xlu1 %v384_v59 }
 0x198   :  { %485 = vadd.xlane.f32.xlu1 %v484_v60 }
 0x1ae   :  { %v370_v2 = vpop.xlane.xlu1 %369 }
 0x1af   :  { %v371_v61 = vrot.slane %v370_v2, 4 }
 0x1b1   :  { %v372_v62 = vadd.f32 %v371_v61, %v370_v2 }
 0x1b3   :  { %v373_v63 = vrot.slane %v372_v62, 2 }
 0x1b5   :  { %v374_v7 = vadd.f32 %v373_v63, %v372_v62 }
 0x1b7   :  { %v375_v10 = vrot.slane %v374_v7, 1 }
 0x1b9   :  { %v376_v12 = vadd.f32 %v375_v10, %v374_v7 }
 0x1cc   :  { %v355_v4 = vpop.xlane.xlu0 %354 }
 0x1cd   :  { %v356_v5 = vrot.slane %v355_v4, 4 }
 0x1cf   :  { %v357_v8 = vadd.f32 %v356_v5, %v355_v4 }
 0x1d1   :  { %v358_v9 = vrot.slane %v357_v8, 2 }
 0x1d3   :  { %v359_v11 = vadd.f32 %v358_v9, %v357_v8 }
 0x1d5   :  { %v360_v0 = vrot.slane %v359_v11, 1 }
 0x1d7   :  { %v361_v13 = vadd.f32 %v360_v0, %v359_v11 }
 0x1d9   :  { %527 = vpush %v361_v13 }
 0x1da   :  { %529 = vpush %v376_v12 }
 0x20a   :  { %s528_s4 = spop %527 }
 0x20b   :  { %s363_s5 = smul.f32 0.00048828125, %s528_s4  ;;  %s530_s7 = spop %529 }
 0x20c   :  { %s378_s9 = smul.f32 0.020408163, %s530_s7 }
 0x20d   :  { %s496_s6 = smul.f32 25.0, %s363_s5 }
 0x20f   :  { %498 = sst [smem:[#allocation13]] %s496_s6 }
 0x221   :  { %v386_v24 = vpop.xlane.xlu1 %385 }
 0x222   :  { %v387_v26 = vrot.slane %v386_v24, 4 }
 0x224   :  { %v388_v28 = vadd.f32 %v387_v26, %v386_v24 }
 0x225   :  { %v486_v29 = vpop.xlane.xlu1 %485 }
 0x226   :  { %v389_v31 = vrot.slane %v388_v28, 2  ;;  %v487_v32 = vrot.slane %v486_v29, 4 }
 0x228   :  { %v488_v35 = vadd.f32 %v487_v32, %v486_v29  ;;  %v390_v36 = vadd.f32 %v389_v31, %v388_v28 }
 0x22a   :  { %v489_v38 = vrot.slane %v488_v35, 2  ;;  %v391_v39 = vrot.slane %v390_v36, 1 }
 0x22c   :  { %v490_v42 = vadd.f32 %v489_v38, %v488_v35  ;;  %v392_v43 = vadd.f32 %v391_v39, %v390_v36 }
 0x22e   :  { %531 = vpush %v392_v43  ;;  %v491_v18 = vrot.slane %v490_v42, 1 }
 0x22f   :  { %533 = vpush %v418_v44 }
 0x230   :  { %535 = vpush %v442_v45  ;;  %v492_v21 = vadd.f32 %v491_v18, %v490_v42 }
 0x231   :  { %537 = vpush %v467_v19 }
 0x232   :  { %539 = vpush %v492_v21 }
 0x25f   :  { %s532_s8 = spop %531 }
 0x260   :  { %s534_s10 = spop %533  ;;  %s394_s11 = smul.f32 0.020408163, %s532_s8 }
 0x261   :  { %s536_s12 = spop %535 }
 0x262   :  { %s444_s13 = ssub.f32 %s378_s9, %s536_s12  ;;  %s538_s14 = spop %537 }
 0x263   :  { %s469_s15 = sadd.f32 %s538_s14, %s534_s10  ;;  %s540_s16 = spop %539 }
 0x264   :  { %s494_s17 = ssub.f32 %s394_s11, %s540_s16 }
 0x265   :  { %s499_s18 = smul.f32 0.00390625, %s469_s15 }
 0x266   :  { %s495_s19 = sadd.f32 %s494_s17, %s444_s13 }
 0x267   :  { %s500_s20 = smul.f32 25.0, %s499_s18 }
 0x268   :  { %s503_s21 = smul.f32 0.00390625, %s495_s19 }
 0x269   :  { %502 = sst [smem:[#allocation13 + $0x1]] %s500_s20 }
 0x26a   :  { %505 = sst [smem:[#allocation13 + $0x2]] %s503_s21 }
 0x26b   :  { %608 = shalt.err (!%p605_p4)
}
 0x26c   :  { %s620_s29 = smov [#allocation13]  }
 0x26d   :  { %513 = dma.smem_to_hbm %s620_s29, 16, %s752_s2, [#allocation10]  }
 0x26e   :  { %613 = dma.done.wait [#allocation10], 16  }
 0x26f   :  { %614 = vsyncadd [#allocation10], 4294967280 }
 0x270   :  { %517 = sfence }
 0x271   :  { %518 = vsyncpa [#allocation9], 1 }
 0x272   :  { %519 = vsyncpa [#allocation12], 1 }
 0x273   :  { %520 = vsyncpa [#allocation10], 1 }

</bundles_post_ra>
